<compile_context>
chip_gen: v6e
topology: v6e:2x2x1
jax: 0.10.0
libtpu: 0.0.40
codegen_flags: <defaults>
</compile_context>

<pallas_src>
import functools

import numpy as np
import jax
import jax.numpy as jnp
from jax import lax
from jax.experimental import pallas as pl
from jax.experimental.pallas import tpu as pltpu

NEG_INF = -1e30  # finite "-inf": exp underflows to exactly 0, no inf arithmetic


def _round_up(n, m):
    return ((n + m - 1) // m) * m


def _pad_to(x, axis, target):
    pad = [(0, 0)] * x.ndim
    pad[axis] = (0, target - x.shape[axis])
    return jnp.pad(x, pad)


def _im2col_k3(x):
    """(B, T, Cin) -> (B, T, 3*Cin): [x[t-1], x[t], x[t+1]] with zero edge pad."""
    xp = jnp.pad(x, ((0, 0), (1, 1), (0, 0)))
    return jnp.concatenate([xp[:, :-2], xp[:, 1:-1], xp[:, 2:]], axis=-1)


def _conv_tower_jax(x, w3, b3, w1, b1):
    """Conv1d(k=3, pad=1) -> ReLU -> Conv1d(k=1), channels-last, plain XLA.

    Used (a) for the hoisted per-batch text tower and (b) as the reference.
    Dropout is identity at inference.
    """
    xp = jnp.pad(x, ((0, 0), (1, 1), (0, 0)))
    y = xp[:, :-2] @ w3[0] + xp[:, 1:-1] @ w3[1] + xp[:, 2:] @ w3[2] + b3
    h = jnp.maximum(y, 0.0)
    return h @ w1 + b1


# ----------------------------------------------------------------------------
# Fused Pallas kernel: unit conv tower | Gram L2 score | log_softmax
# ----------------------------------------------------------------------------

def fused_aligner_kernel(unit_ref, temb_ref, trow_ref,
                         fw3_ref, fb3_ref, fw1_ref, fb1_ref,
                         out_ref, *, temperature):
    """One (batch, feat-tile) block of the aligner.

    unit_ref : (1, TILE_F, 3*F)     im2col'd unit embeddings (compute dtype)
    temb_ref : (1, Tt_pad, C_pad)   hoisted text conv output (compute dtype)
    trow_ref : (1, 2, Tt_pad) f32   row 0 = ||t_j||^2 ; row 1 = 0 / NEG_INF mask
    fw3      : (3*F, C_pad)  fb3 : (1, C_pad)  fw1 : (C_pad, C_pad)  fb1 : (1, C_pad)
    out_ref  : (1, TILE_F, Tt_pad) f32  log_softmax(-temperature * ||f - t||_2)
    """
    # Unit conv tower: im2col made the k=3 conv one MXU matmul (K = 3*F).
    x = unit_ref[0]
    y = jnp.dot(x, fw3_ref[...], preferred_element_type=jnp.float32) + fb3_ref[...]
    h = jnp.maximum(y, 0.0)
    f_emb = (jnp.dot(h.astype(fw1_ref.dtype), fw1_ref[...],
                     preferred_element_type=jnp.float32) + fb1_ref[...])   # (TILE_F, C_pad) f32

    # Pairwise L2 via Gram decomposition; ||t||^2 arrives as a precomputed row
    # (sublane-broadcast VPU add, no ones-matmul and no (F,T,C) temp).
    t_emb = temb_ref[0]
    gram = lax.dot_general(f_emb.astype(t_emb.dtype), t_emb,
                           (((1,), (1,)), ((), ())),
                           preferred_element_type=jnp.float32)             # (TILE_F, Tt_pad)
    f_sq = jnp.sum(f_emb * f_emb, axis=-1, keepdims=True)                  # (TILE_F, 1)
    trow = trow_ref[0]
    t_sq = trow[0:1, :]                                                    # (1, Tt_pad)
    msk = trow[1:2, :]                                                     # (1, Tt_pad)

    d2 = jnp.maximum(f_sq + t_sq - 2.0 * gram, 0.0)  # clamp: fp rounding can go < 0
    # Padded text columns: additive NEG_INF -> exp(.) == 0 in the normalizer.
    score = (-temperature) * jnp.sqrt(d2) + msk

    # log_softmax over the text (lane) axis.
    # TODO(synk): on v6e/v7x the sqrt/exp/scale passes could run in bf16 at 2x
    # packed VPU/EUP rate (not on v5e); kept f32 to preserve tolerances.
    m = jnp.max(score, axis=-1, keepdims=True)
    s = score - m
    lse = jnp.log(jnp.sum(jnp.exp(s), axis=-1, keepdims=True))
    out_ref[0] = s - lse


# ----------------------------------------------------------------------------
# Wrapper
# ----------------------------------------------------------------------------

def run_fused_aligner(embs_text, embs_unit, params, temperature, *,
                      use_bf16=True, base_tile_f=512,
                      vmem_budget_bytes=28 << 20):
    B, Tt, E = embs_text.shape
    _, Tf, F = embs_unit.shape
    C = params["t_w1"].shape[1]

    compute_dtype = jnp.bfloat16 if use_bf16 else jnp.float32
    in_bytes = 2 if use_bf16 else 4

    # Lane-dense score output: pad text (output lane dim) to 128x; pad the
    # aligner channel dim to 128x so t_emb/f_emb are lane-dense on the MXU.
    Tt_pad = _round_up(Tt, 128)
    C_pad = _round_up(C, 128)

    # Feature-axis tiling: Tt-aware footprint cap + balanced last tile.
    Tf_min = _round_up(Tf, 16)
    per_row = Tt_pad * 4 * 5  # out double-buffer (2x) + ~3 live f32 score temps
    cap = max(16, (vmem_budget_bytes // per_row) // 16 * 16)
    tgt = max(16, min(base_tile_f, cap))
    n_tf = max(1, -(-Tf_min // tgt))
    tf_blk = _round_up(-(-Tf_min // n_tf), 16)
    Tf_pad = tf_blk * n_tf

    # ---- hoisted TEXT conv tower: once per batch, tiny plain-XLA matmuls ----
    t_emb = _conv_tower_jax(embs_text, params["t_w3"], params["t_b3"],
                            params["t_w1"], params["t_b1"])            # (B, Tt, C) f32
    t_emb = _pad_to(t_emb, 1, Tt_pad)                                  # zero time pad
    t_sq = jnp.sum(t_emb * t_emb, axis=-1)                             # (B, Tt_pad)
    mask_row = jnp.where(jnp.arange(Tt_pad) < Tt, 0.0, NEG_INF).astype(jnp.float32)
    t_rows = jnp.stack([t_sq, jnp.broadcast_to(mask_row, (B, Tt_pad))], axis=1)  # (B,2,Tt_pad)
    t_emb = _pad_to(t_emb, 2, C_pad).astype(compute_dtype)             # (B, Tt_pad, C_pad)

    # ---- unit side: im2col in compute dtype (halves the HBM read) ----
    unit_cat = _im2col_k3(_pad_to(embs_unit, 1, Tf_pad)).astype(compute_dtype)

    # ---- unit conv weights: flatten k=3, zero-pad output channels to 128x ----
    fw3 = _pad_to(params["f_w3"].reshape(3 * F, C), 1, C_pad).astype(compute_dtype)
    fw1 = _pad_to(_pad_to(params["f_w1"], 0, C_pad), 1, C_pad).astype(compute_dtype)
    fb3 = _pad_to(params["f_b3"], 1, C_pad).astype(jnp.float32)
    fb1 = _pad_to(params["f_b1"], 1, C_pad).astype(jnp.float32)

    kernel = functools.partial(fused_aligner_kernel, temperature=float(temperature))

    flops = int(2 * B * Tf_pad * (3 * F * C_pad + C_pad * C_pad + Tt_pad * C_pad))
    transc = int(2 * B * Tf_pad * Tt_pad)                 # sqrt + exp per score elem
    bytes_acc = int(B * Tf_pad * Tt_pad * 4               # output write
                    + B * Tf_pad * 3 * F * in_bytes       # unit_cat read
                    + B * n_tf * Tt_pad * (C_pad * in_bytes + 2 * 4)
                    + (3 * F + C_pad) * C_pad * in_bytes)

    vmem_est = (2 * tf_blk * Tt_pad * 4                   # out double-buffer
                + 3 * tf_blk * Tt_pad * 4                 # live score temps
                + 2 * tf_blk * 3 * F * in_bytes           # unit double-buffer
                + 2 * Tt_pad * C_pad * in_bytes           # t_emb double-buffer
                + 2 * 2 * Tt_pad * 4                      # t_rows
                + (3 * F + C_pad) * C_pad * in_bytes + 2 * C_pad * 4)
    vmem_limit = int(min(56 << 20, max(32 << 20, 2 * vmem_est)))

    out = pl.pallas_call(
        kernel,
        out_shape=jax.ShapeDtypeStruct((B, Tf_pad, Tt_pad), jnp.float32),
        grid=(B, n_tf),
        in_specs=[
            pl.BlockSpec((1, tf_blk, 3 * F), lambda b, f: (b, f, 0)),
            pl.BlockSpec((1, Tt_pad, C_pad), lambda b, f: (b, 0, 0)),
            pl.BlockSpec((1, 2, Tt_pad), lambda b, f: (b, 0, 0)),
            pl.BlockSpec((3 * F, C_pad), lambda b, f: (0, 0)),
            pl.BlockSpec((1, C_pad), lambda b, f: (0, 0)),
            pl.BlockSpec((C_pad, C_pad), lambda b, f: (0, 0)),
            pl.BlockSpec((1, C_pad), lambda b, f: (0, 0)),
        ],
        out_specs=pl.BlockSpec((1, tf_blk, Tt_pad), lambda b, f: (b, f, 0)),
        compiler_params=pltpu.CompilerParams(
            dimension_semantics=("parallel", "parallel"),
            vmem_limit_bytes=vmem_limit),
        cost_estimate=pl.CostEstimate(flops=flops, transcendentals=transc,
                                      bytes_accessed=bytes_acc),
    )(unit_cat, t_emb, t_rows, fw3, fb3, fw1, fb1)

    # slice off the lane/sublane padding
    return out[:, :Tf, :Tt]


# ----------------------------------------------------------------------------
# Host-side Viterbi (sequential, data-dependent DP; the PyTorch reference also
# drops to .cpu().numpy() for this part).
# ----------------------------------------------------------------------------

def _monotonic_alignment_search(attn_lprob):
    T_feat, T_text = attn_lprob.shape
    Q = np.full((T_text, T_feat), fill_value=-np.inf)
    log_prob = attn_lprob.transpose(1, 0)
    for j in range(T_feat):
        Q[0, j] = log_prob[0, :j + 1].sum()
    for j in range(1, T_feat):
        for i in range(1, min(j + 1, T_text)):
            Q[i, j] = max(Q[i - 1, j - 1], Q[i, j - 1]) + log_prob[i, j]
    A = np.full((T_feat,), fill_value=T_text - 1)
    for j in range(T_feat - 2, -1, -1):
        i_a = A[j + 1] - 1
        i_b = A[j + 1]
        if i_b == 0:
            argmax_i = 0
        elif Q[i_a, j] >= Q[i_b, j]:
            argmax_i = i_a
        else:
            argmax_i = i_b
        A[j] = argmax_i
    return A


def viterbi_decode_np(attn_lprob, text_lengths, feat_lengths):
    B, _, T_text = attn_lprob.shape
    durations = np.zeros((B, T_text), dtype=np.int64)
    for b in range(B):
        assert feat_lengths[b] > 0 and text_lengths[b] > 0
        cur = attn_lprob[b, :feat_lengths[b], :text_lengths[b]].astype(np.float64)
        viterbi = _monotonic_alignment_search(cur)
        _durations = np.bincount(viterbi)
        durations[b, :len(_durations)] = _durations
    return durations


# ----------------------------------------------------------------------------
# Module forwards
# ----------------------------------------------------------------------------

def unity2_alignment_frontend(input_text, input_unit, params):
    """UnitY2AlignmentFrontend.forward: two embedding lookups -> (embs_text, embs_unit)."""
    # Plain-JAX gather: a memory-bound table lookup with no fusible compute.
    embs_text = params["emb_text"][input_text]      # (B, T_text, E)
    embs_unit = params["emb_unit"][input_unit]      # (B, T_unit, F)
    return embs_text, embs_unit


def unity2_alignment_forward(input_text, input_unit, params, temperature,
                             reduction_factor=1, use_bf16=True):
    # frontend (the spec module)
    embs_text, embs_unit = unity2_alignment_frontend(input_text, input_unit, params)
    B, T_text, _ = embs_text.shape
    T_unit = embs_unit.shape[1]

    # unit conv tower + pairwise-distance score + log_softmax: ONE fused Pallas call
    # (text conv tower hoisted to a per-batch XLA matmul feeding the kernel)
    attn_lprob = run_fused_aligner(embs_text, embs_unit, params, temperature,
                                   use_bf16=use_bf16)

    # viterbi durations (host, sequential DP, matching the PyTorch reference).
    # Model forward always passes full lengths -> no padding mask needed.
    # TODO(synk): reduction_factor > 1 stride + postprocess_alignment path not exercised.
    text_lengths = [T_text] * B
    feat_lengths = [T_unit] * B
    attn_hard_dur = viterbi_decode_np(np.asarray(jax.device_get(attn_lprob)),
                                      text_lengths, feat_lengths)
    return attn_lprob, jnp.asarray(attn_hard_dur)


# ----------------------------------------------------------------------------
# Plain-JAX reference (correctness sanity check)
# ----------------------------------------------------------------------------

def _ref_align(f, t, temperature):
    diff = f[:, :, None, :] - t[:, None, :, :]
    score = -temperature * jnp.sqrt(jnp.sum(diff * diff, axis=-1))
    return jax.nn.log_softmax(score, axis=-1)


# ----------------------------------------------------------------------------

if __name__ == "__main__":
    B = 2
    T_TEXT = 8
    T_UNIT = 16
    EMBED_DIM = 32     # aligner channel dim / text embedding dim
    FEAT_DIM = 32      # unit embedding dim (encoder feat_dim)
    TEXT_VOCAB = 20
    UNIT_VOCAB = 24
    TEMPERATURE = 1.0
    REDUCTION_FACTOR = 1

    key = jax.random.PRNGKey(0)
    ks = jax.random.split(key, 12)
    params = {
        "emb_text": jax.random.normal(ks[0], (TEXT_VOCAB, EMBED_DIM), jnp.float32) * 0.5,
        "emb_unit": jax.random.normal(ks[1], (UNIT_VOCAB, FEAT_DIM), jnp.float32) * 0.5,
        # t_conv: Conv1d(E,E,k=3,pad=1) + ReLU, then Conv1d(E,E,k=1)
        "t_w3": jax.random.normal(ks[2], (3, EMBED_DIM, EMBED_DIM), jnp.float32) * 0.1,
        "t_b3": jax.random.normal(ks[3], (1, EMBED_DIM), jnp.float32) * 0.1,
        "t_w1": jax.random.normal(ks[4], (EMBED_DIM, EMBED_DIM), jnp.float32) * 0.1,
        "t_b1": jax.random.normal(ks[5], (1, EMBED_DIM), jnp.float32) * 0.1,
        # f_conv: Conv1d(F,E,k=3,pad=1) + ReLU, then Conv1d(E,E,k=1,stride=rf=1)
        "f_w3": jax.random.normal(ks[6], (3, FEAT_DIM, EMBED_DIM), jnp.float32) * 0.1,
        "f_b3": jax.random.normal(ks[7], (1, EMBED_DIM), jnp.float32) * 0.1,
        "f_w1": jax.random.normal(ks[8], (EMBED_DIM, EMBED_DIM), jnp.float32) * 0.1,
        "f_b1": jax.random.normal(ks[9], (1, EMBED_DIM), jnp.float32) * 0.1,
    }

    input_text = jax.random.randint(ks[10], (B, T_TEXT), 0, TEXT_VOCAB)
    input_unit = jax.random.randint(ks[11], (B, T_UNIT), 0, UNIT_VOCAB)

    # fast path (bf16 matmul operands, f32 accumulation)
    attn_lprob, attn_hard_dur = unity2_alignment_forward(
        input_text, input_unit, params, TEMPERATURE, REDUCTION_FACTOR, use_bf16=True)
    attn_lprob = jax.block_until_ready(attn_lprob)
    attn_hard_dur = jax.block_until_ready(attn_hard_dur)

    # plain-JAX reference of the same forward pass
    ref_text = _conv_tower_jax(params["emb_text"][input_text],
                               params["t_w3"], params["t_b3"],
                               params["t_w1"], params["t_b1"])
    ref_feat = _conv_tower_jax(params["emb_unit"][input_unit],
                               params["f_w3"], params["f_b3"],
                               params["f_w1"], params["f_b1"])
    ref_lprob = _ref_align(ref_feat, ref_text, TEMPERATURE)

    # bf16 operands -> looser tolerance vs the f32 reference
    np.testing.assert_allclose(np.asarray(attn_lprob), np.asarray(ref_lprob),
                               rtol=3e-2, atol=3e-2)

    # strict f32 path of the same kernel for a tight numerical check
    embs_text, embs_unit = unity2_alignment_frontend(input_text, input_unit, params)
    attn_lprob_f32 = jax.block_until_ready(
        run_fused_aligner(embs_text, embs_unit, params, TEMPERATURE, use_bf16=False))
    np.testing.assert_allclose(np.asarray(attn_lprob_f32), np.asarray(ref_lprob),
                               rtol=2e-3, atol=2e-3)

    # each feature frame is assigned to exactly one text token
    assert np.all(np.asarray(attn_hard_dur).sum(axis=-1) == T_UNIT)
    assert attn_lprob.shape == (B, T_UNIT, T_TEXT)
    assert attn_hard_dur.shape == (B, T_TEXT)

    print("KERNEL_OK")
</pallas_src>

<mosaic_0001>
module attributes {stable_mosaic.version = 11 : i64} {
  func.func @fused_aligner_kernel(%arg0: i32, %arg1: i32, %arg2: memref<1x16x96xbf16, #tpu.memory_space<vmem>>, %arg3: memref<1x128x128xbf16, #tpu.memory_space<vmem>>, %arg4: memref<1x2x128xf32, #tpu.memory_space<vmem>>, %arg5: memref<96x128xbf16, #tpu.memory_space<vmem>>, %arg6: memref<1x128xf32, #tpu.memory_space<vmem>>, %arg7: memref<128x128xbf16, #tpu.memory_space<vmem>>, %arg8: memref<1x128xf32, #tpu.memory_space<vmem>>, %arg9: memref<1x16x128xf32, #tpu.memory_space<vmem>>) attributes {dimension_semantics = [#tpu.dimension_semantics<parallel>, #tpu.dimension_semantics<parallel>], iteration_bounds = array<i64: 2, 1>, scalar_prefetch = 0 : i64, scratch_operands = 0 : i64, tpu.core_type = #tpu.core_type<tc>, window_params = [{transform_indices = @transform_0, window_bounds = array<i64: 1, 16, 96>}, {transform_indices = @transform_1, window_bounds = array<i64: 1, 128, 128>}, {transform_indices = @transform_2, window_bounds = array<i64: 1, 2, 128>}, {pipeline_mode = #tpu.pipeline_mode<synchronous>, transform_indices = @transform_3, window_bounds = array<i64: 96, 128>}, {pipeline_mode = #tpu.pipeline_mode<synchronous>, transform_indices = @transform_4, window_bounds = array<i64: 1, 128>}, {pipeline_mode = #tpu.pipeline_mode<synchronous>, transform_indices = @transform_5, window_bounds = array<i64: 128, 128>}, {pipeline_mode = #tpu.pipeline_mode<synchronous>, transform_indices = @transform_6, window_bounds = array<i64: 1, 128>}, {transform_indices = @transform_7, window_bounds = array<i64: 1, 16, 128>}]} {
    %c0 = arith.constant 0 : index
    %c0_0 = arith.constant 0 : index
    %c0_1 = arith.constant 0 : index
    %0 = vector.load %arg2[%c0, %c0_0, %c0_1] : memref<1x16x96xbf16, #tpu.memory_space<vmem>>, vector<1x16x96xbf16>
    %1 = vector.shape_cast %0 : vector<1x16x96xbf16> to vector<16x96xbf16>
    %c0_2 = arith.constant 0 : index
    %c0_3 = arith.constant 0 : index
    %2 = vector.load %arg5[%c0_2, %c0_3] : memref<96x128xbf16, #tpu.memory_space<vmem>>, vector<96x128xbf16>
    %cst = arith.constant dense<0.000000e+00> : vector<16x128xf32>
    %3 = tpu.matmul %1, %2, %cst {dimension_numbers = #tpu.dot_dimension_numbers<[1], [0], [0], [1], [0, 0, 1, 1], [], []>} : vector<16x96xbf16>, vector<96x128xbf16>, vector<16x128xf32> -> vector<16x128xf32>
    %c0_4 = arith.constant 0 : index
    %c0_5 = arith.constant 0 : index
    %4 = vector.load %arg6[%c0_4, %c0_5] : memref<1x128xf32, #tpu.memory_space<vmem>>, vector<1x128xf32>
    %5 = vector.broadcast %4 : vector<1x128xf32> to vector<16x128xf32>
    %6 = arith.addf %3, %5 : vector<16x128xf32>
    %cst_6 = arith.constant 0.000000e+00 : f32
    %7 = vector.broadcast %cst_6 : f32 to vector<16x128xf32>
    %8 = arith.maximumf %6, %7 : vector<16x128xf32>
    %9 = arith.truncf %8 : vector<16x128xf32> to vector<16x128xbf16>
    %c0_7 = arith.constant 0 : index
    %c0_8 = arith.constant 0 : index
    %10 = vector.load %arg7[%c0_7, %c0_8] : memref<128x128xbf16, #tpu.memory_space<vmem>>, vector<128x128xbf16>
    %cst_9 = arith.constant dense<0.000000e+00> : vector<16x128xf32>
    %11 = tpu.matmul %9, %10, %cst_9 {dimension_numbers = #tpu.dot_dimension_numbers<[1], [0], [0], [1], [0, 0, 1, 1], [], []>} : vector<16x128xbf16>, vector<128x128xbf16>, vector<16x128xf32> -> vector<16x128xf32>
    %c0_10 = arith.constant 0 : index
    %c0_11 = arith.constant 0 : index
    %12 = vector.load %arg8[%c0_10, %c0_11] : memref<1x128xf32, #tpu.memory_space<vmem>>, vector<1x128xf32>
    %13 = vector.broadcast %12 : vector<1x128xf32> to vector<16x128xf32>
    %14 = arith.addf %11, %13 : vector<16x128xf32>
    %c0_12 = arith.constant 0 : index
    %c0_13 = arith.constant 0 : index
    %c0_14 = arith.constant 0 : index
    %15 = vector.load %arg3[%c0_12, %c0_13, %c0_14] : memref<1x128x128xbf16, #tpu.memory_space<vmem>>, vector<1x128x128xbf16>
    %16 = vector.shape_cast %15 : vector<1x128x128xbf16> to vector<128x128xbf16>
    %17 = arith.truncf %14 : vector<16x128xf32> to vector<16x128xbf16>
    %cst_15 = arith.constant dense<0.000000e+00> : vector<16x128xf32>
    %18 = tpu.matmul %17, %16, %cst_15 {dimension_numbers = #tpu.dot_dimension_numbers<[1], [1], [0], [0], [0, 0, 1, 0], [], []>} : vector<16x128xbf16>, vector<128x128xbf16>, vector<16x128xf32> -> vector<16x128xf32>
    %19 = arith.mulf %14, %14 : vector<16x128xf32>
    %cst_16 = arith.constant dense<0.000000e+00> : vector<16xf32>
    %20 = vector.multi_reduction <add>, %19, %cst_16 [1] : vector<16x128xf32> to vector<16xf32>
    %21 = vector.shape_cast %20 : vector<16xf32> to vector<16x1xf32>
    %c0_17 = arith.constant 0 : index
    %c0_18 = arith.constant 0 : index
    %c0_19 = arith.constant 0 : index
    %22 = vector.load %arg4[%c0_17, %c0_18, %c0_19] : memref<1x2x128xf32, #tpu.memory_space<vmem>>, vector<1x2x128xf32>
    %23 = vector.shape_cast %22 : vector<1x2x128xf32> to vector<2x128xf32>
    %24 = vector.extract_strided_slice %23 {offsets = [0, 0], sizes = [1, 128], strides = [1, 1]} : vector<2x128xf32> to vector<1x128xf32>
    %25 = vector.extract_strided_slice %23 {offsets = [1, 0], sizes = [1, 128], strides = [1, 1]} : vector<2x128xf32> to vector<1x128xf32>
    %26 = vector.broadcast %21 : vector<16x1xf32> to vector<16x128xf32>
    %27 = vector.broadcast %24 : vector<1x128xf32> to vector<16x128xf32>
    %28 = arith.addf %26, %27 : vector<16x128xf32>
    %cst_20 = arith.constant 2.000000e+00 : f32
    %29 = vector.broadcast %cst_20 : f32 to vector<16x128xf32>
    %30 = arith.mulf %29, %18 : vector<16x128xf32>
    %31 = arith.subf %28, %30 : vector<16x128xf32>
    %cst_21 = arith.constant 0.000000e+00 : f32
    %32 = vector.broadcast %cst_21 : f32 to vector<16x128xf32>
    %33 = arith.maximumf %31, %32 : vector<16x128xf32>
    %34 = math.sqrt %33 : vector<16x128xf32>
    %cst_22 = arith.constant -1.000000e+00 : f32
    %35 = vector.broadcast %cst_22 : f32 to vector<16x128xf32>
    %36 = arith.mulf %35, %34 : vector<16x128xf32>
    %37 = vector.broadcast %25 : vector<1x128xf32> to vector<16x128xf32>
    %38 = arith.addf %36, %37 : vector<16x128xf32>
    %cst_23 = arith.constant dense<0xFF800000> : vector<16xf32>
    %39 = vector.multi_reduction <maximumf>, %38, %cst_23 [1] : vector<16x128xf32> to vector<16xf32>
    %40 = vector.shape_cast %39 : vector<16xf32> to vector<16x1xf32>
    %41 = vector.broadcast %40 : vector<16x1xf32> to vector<16x128xf32>
    %42 = arith.subf %38, %41 : vector<16x128xf32>
    %43 = math.exp %42 : vector<16x128xf32>
    %cst_24 = arith.constant dense<0.000000e+00> : vector<16xf32>
    %44 = vector.multi_reduction <add>, %43, %cst_24 [1] : vector<16x128xf32> to vector<16xf32>
    %45 = vector.shape_cast %44 : vector<16xf32> to vector<16x1xf32>
    %46 = math.log %45 : vector<16x1xf32>
    %47 = vector.broadcast %46 : vector<16x1xf32> to vector<16x128xf32>
    %48 = arith.subf %42, %47 : vector<16x128xf32>
    %c0_25 = arith.constant 0 : index
    %c0_26 = arith.constant 0 : index
    %c0_27 = arith.constant 0 : index
    %49 = vector.load %arg9[%c0_25, %c0_26, %c0_27] : memref<1x16x128xf32, #tpu.memory_space<vmem>>, vector<1x16x128xf32>
    %50 = vector.shape_cast %49 : vector<1x16x128xf32> to vector<16x128xf32>
    %51 = vector.shape_cast %48 : vector<16x128xf32> to vector<1x16x128xf32>
    tpu.vector_store %arg9[%c0_25, %c0_26, %c0_27], %51 {strides = array<i32>} : memref<1x16x128xf32, #tpu.memory_space<vmem>>, vector<1x16x128xf32>,
    return
  }
  func.func @transform_0(%arg0: i32, %arg1: i32) -> (i32, i32, i32) {
    %c0_i32 = arith.constant 0 : i32
    %c0_i32_0 = arith.constant 0 : i32
    return %arg0, %arg1, %c0_i32 : i32, i32, i32
  }
  func.func @transform_1(%arg0: i32, %arg1: i32) -> (i32, i32, i32) {
    %c0_i32 = arith.constant 0 : i32
    %c0_i32_0 = arith.constant 0 : i32
    %c0_i32_1 = arith.constant 0 : i32
    return %arg0, %c0_i32, %c0_i32_0 : i32, i32, i32
  }
  func.func @transform_2(%arg0: i32, %arg1: i32) -> (i32, i32, i32) {
    %c0_i32 = arith.constant 0 : i32
    %c0_i32_0 = arith.constant 0 : i32
    %c0_i32_1 = arith.constant 0 : i32
    return %arg0, %c0_i32, %c0_i32_0 : i32, i32, i32
  }
  func.func @transform_3(%arg0: i32, %arg1: i32) -> (i32, i32) {
    %c0_i32 = arith.constant 0 : i32
    %c0_i32_0 = arith.constant 0 : i32
    %c0_i32_1 = arith.constant 0 : i32
    return %c0_i32, %c0_i32_0 : i32, i32
  }
  func.func @transform_4(%arg0: i32, %arg1: i32) -> (i32, i32) {
    %c0_i32 = arith.constant 0 : i32
    %c0_i32_0 = arith.constant 0 : i32
    %c0_i32_1 = arith.constant 0 : i32
    return %c0_i32, %c0_i32_0 : i32, i32
  }
  func.func @transform_5(%arg0: i32, %arg1: i32) -> (i32, i32) {
    %c0_i32 = arith.constant 0 : i32
    %c0_i32_0 = arith.constant 0 : i32
    %c0_i32_1 = arith.constant 0 : i32
    return %c0_i32, %c0_i32_0 : i32, i32
  }
  func.func @transform_6(%arg0: i32, %arg1: i32) -> (i32, i32) {
    %c0_i32 = arith.constant 0 : i32
    %c0_i32_0 = arith.constant 0 : i32
    %c0_i32_1 = arith.constant 0 : i32
    return %c0_i32, %c0_i32_0 : i32, i32
  }
  func.func @transform_7(%arg0: i32, %arg1: i32) -> (i32, i32, i32) {
    %c0_i32 = arith.constant 0 : i32
    %c0_i32_0 = arith.constant 0 : i32
    return %arg0, %arg1, %c0_i32 : i32, i32, i32
  }
}

</mosaic_0001>

<bundles_post_ra>
// kernel: tpu_custom_call.1
= control target key start
LH: loop header
LB: loop body
LE: loop exit
PB: predicated region body
PF: predicated region fallthrough
CT: control target
= control target key end

     0   :  { %s1823_s0 = inlined_call_operand.hbm [shape: bf16[2,16,96], index: 0, kind: input, shape index: {}]   ;;  %s1824_s1 = inlined_call_operand.hbm [shape: bf16[2,128,128], index: 1, kind: input, shape index: {}]   ;;  %s1825_s2 = inlined_call_operand.hbm [shape: f32[2,2,128], index: 2, kind: input, shape index: {}]   ;;  %s1826_s3 = inlined_call_operand.hbm [shape: bf16[96,128], index: 3, kind: input, shape index: {}]   ;;  %s1827_s4 = inlined_call_operand.vmem [shape: f32[1,128], index: 4, kind: input, shape index: {}]   ;;  %s1828_s5 = inlined_call_operand.hbm [shape: bf16[128,128], index: 5, kind: input, shape index: {}]   ;;  %s1829_s6 = inlined_call_operand.vmem [shape: f32[1,128], index: 6, kind: input, shape index: {}]   ;;  %s1830_s7 = inlined_call_operand.hbm [shape: f32[2,16,128], index: 7, kind: output, shape index: {}]  }
   0x1   :  { %1845 = sst [smem:[#allocation21_spill]] %s1824_s1 }
   0x2   :  { %1846 = sst [smem:[#allocation22_spill]] %s1826_s3 }
   0x3   :  { %1847 = sst [smem:[#allocation23_spill]] %s1830_s7 }
   0x4   :  { %12 = vsyncpa [#allocation3], 0 }
   0x5   :  { %14 = vsyncpa [#allocation3 + $0x1], 0 }
   0x6   :  { %15 = vsyncpa [#allocation6], 0 }
   0x7   :  { %17 = vsyncpa [#allocation6 + $0x1], 0 }
   0x8   :  { %18 = vsyncpa [#allocation9], 0 }
   0x9   :  { %19 = vsyncpa [#allocation4], 0 }
   0xa   :  { %21 = vsyncpa [#allocation4 + $0x1], 0  ;;  %s1525_s24 = smov 0   ;;  %s1527_s25 = smov 0  }
   0xb   :  { %s1529_s26 = smov 0   ;;  %s1531_s27 = smov 0  }
   0xc   :  { %s1533_s28 = smov 0   ;;  %s1535_s29 = smov 0  }
   0xd LB: > { %1848 = sst [smem:[#allocation16_spill]] %s1451_s24  ;;  %s1556_s30 = sadd.s32 4294967295, %s1471_s29   ;;  %s1471_s29 = sphi %s1535_s29, %s27_s29   ;;  %s1467_s28 = sphi %s1533_s28, %s1885_s28   ;;  %s1463_s27 = sphi %s1531_s27, %s1884_s27   ;;  %s1459_s26 = sphi %s1529_s26, %s1883_s26   ;;  %s1455_s25 = sphi %s1527_s25, %s1882_s25   ;;  %s1451_s24 = sphi %s1525_s24, %s1881_s24  }
   0xe   : > { %1849 = sst [smem:[#allocation17_spill]] %s1463_s27  ;;  %s978_s8 = sadd.s32 4294967294, %s1471_s29  }
   0xf   : > { %p55_p0 = scmp.ne.s32.totalorder %s1459_s26, %s1455_s25  ;;  %p56_p1 = scmp.eq.s32.totalorder %s1471_s29, 0 }
  0x10   : > { %p61_p2 = scmp.ne.s32.totalorder %s1455_s25, %s1451_s24  ;;  %p1831_p3 = scmp.eq.s32.totalorder %s1556_s30, 0 }
  0x11   : > { %p223_p4 = scmp.eq.s32.totalorder %s1556_s30, 1  ;;  %p1567_p5 = por %p56_p1, %p55_p0 }
  0x12   : > { %p229_p6 = scmp.eq.s32.totalorder %s978_s8, 1  ;;  %p1573_p7 = por %p1831_p3, %p61_p2 }
  0x13   : > { %p1577_p8 = por %p223_p4, %p55_p0  ;;  %p979_p10 = scmp.ge.s32.totalorder %s1471_s29, 1 }
  0x14   : > { %s1851_s11 = scalar_select %p1573_p7, 1, 0 }
  0x15   : > { %s1852_s12 = scalar_select %p1577_p8, 1, 0 }
  0x16   : > { %p1581_p9 = por %p229_p6, %p61_p2  ;;  %p236_p11 = scmp.lt.s32.totalorder %s1471_s29, 3 }
  0x17   : > { %1853 = sst [smem:[#allocation18_spill]] %s1852_s12  ;;  %s1473_s15 = smov [#allocation8]  }
  0x18   : > { %s1854_s13 = scalar_select %p1581_p9, 1, 0 }
  0x19   : > { %p1587_p12 = pnand %p979_p10, %p236_p11  ;;  %s248_s16 = sshll.u32 %s1473_s15, 4  ;;  %s249_s16 = int_to_ptr.vmem [resolvable:$true] %s248_s16 }
  0x1a   : > { %1855 = sst [smem:[#allocation19_spill]] %s1854_s13  ;;  %s39_s18 = sadd.s32 1, %s1467_s28 }
  0x1b   : > { %p1129_p13 = pneg %p1587_p12  ;;  %s1603_s19 = sand.u32 1, %s1459_s26  }
  0x1c   : > { %p1605_p2 = scmp.ge.s32.totalorder %s39_s18, 2  ;;  %s1258_s21 = scalar_lea.vmem %s249_s16, 768 }
  0x1d   : > { %p1597_p4 = pnand %p1129_p13, %p1831_p3  ;;  %p1259_p10 = scmp.ne.s32.totalorder %s249_s16, %s1258_s21 }
  0x1e   : > { %p1266_p0 = scmp.lt.s32.totalorder %s249_s16, %s249_s16  ;;  %p1267_p3 = scmp.lt.s32.totalorder %s1258_s21, %s1258_s21 }
  0x1f   : > { %p1249_p6 = pneg %p1597_p4 }
  0x20   : > { %p1268_p1 = por %p1267_p3, %p1266_p0 }
  0x21   : > { %p1261_p11 = pnand %p1259_p10, %p1249_p6 }
  0x23   : > { %p1262_p13 = pneg %p1261_p11 }
  0x25   : > { %p1269_p9 = pnand %p1268_p1, %p1262_p13 }
  0x27   : > { %1272 = shalt.err (!%p1269_p9)
}
  0x28   : > { %s1837_s22 = smov 64   ;;  %s1839_s23 = smov 4  }
  0x29   : > { %s1859_s3 = sld [smem:[#allocation22_spill]]  ;;  %s1887_s18 = smov (%p1605_p2, %s39_s18), 0 }
  0x2a   : > { %1860 = sst [smem:[#allocation20_spill]] %s1887_s18  ;;  %p1861_p3 = scmp.lt.s32.totalorder %s1471_s29, 2 }
  0x2b   : > { %s304_s9 = sand.u32 1, %s1471_s29   ;;  %s43_s13 = ssub.s32 %s1467_s28, %s1887_s18 }
  0x2c   : > { %p1630_p9 = pnand %p1861_p3, %p1567_p5  ;;  %p46_p0 = scmp.eq.s32.totalorder %s43_s13, 0 }
  0x2d   : > { %s986_s24 = sshll.u32 %s1603_s19, 6  ;;  %s1030_s7 = sshll.u32 %s1467_s28, 10 }
  0x2e   : > { %s1863_s12 = sadd.s32 1, %s1459_s26  ;;  %s1864_s1 = sld [smem:[#allocation21_spill]] }
  0x2f   : > { %1132 = dma.hbm_to_vmem [thread:$0]  (!%p1597_p4), %s1859_s3, 768, %s249_s16, [#allocation9], %s1837_s22, %s1837_s22, %s1839_s23  }
  0x30   : > { %s1642_s8 = scalar_select %p46_p0, %s1459_s26, %s1863_s12  }
  0x31   : > { %s308_s15 = scalar_lea.vmem [#allocation5], %s986_s24  ;;  %s1476_s23 = smov [#allocation10]  }
  0x32   : > { %s315_s22 = sshll.u32 %s308_s15, 4  ;;  %s264_s3 = sshll.u32 %s1476_s23, 4  ;;  %s316_s22 = int_to_ptr.vmem [resolvable:$true] %s315_s22  ;;  %s265_s3 = int_to_ptr.vmem [resolvable:$true] %s264_s3 }
  0x33   : > { %s1647_s27 = scalar_lea.sflag [#allocation6], %s304_s9  ;;  %p1842_p5 = pneg %p1630_p9 }
  0x34   : > { %s314_s10 = scalar_lea.hbm %s1864_s1, %s1030_s7  ;;  %s1286_s18 = scalar_lea.vmem %s316_s22, 1024 }
  0x35   : > { %p1287_p1 = scmp.ne.s32.totalorder %s316_s22, %s1286_s18  ;;  %s1477_s12 = smov [#allocation5]  }
  0x36   : > { %s1291_s13 = sshll.u32 %s1477_s12, 4  ;;  %s1292_s13 = int_to_ptr.vmem [resolvable:$false] %s1291_s13 }
  0x37   : > { %p1289_p2 = pnand %p1287_p1, %p1842_p5  ;;  %s1293_s16 = scalar_lea.vmem %s1292_s13, 2048 }
  0x38   : > { %p1294_p11 = scmp.lt.s32.totalorder %s316_s22, %s1292_s13  ;;  %p1295_p13 = scmp.lt.s32.totalorder %s1293_s16, %s1286_s18 }
  0x39   : > { %p1290_p10 = pneg %p1289_p2 }
  0x3a   : > { %p1296_p3 = por %p1295_p13, %p1294_p11 }
  0x3c   : > { %p1297_p0 = pnand %p1296_p3, %p1290_p10 }
  0x3e   : > { %1300 = shalt.err (!%p1297_p0)
}
  0x3f   : > { %s1865_s7 = smov 4   ;;  %s1866_s24 = smov 64  }
  0x40   : > { %1142 = dma.hbm_to_vmem [thread:$0]  (!%p1630_p9), %s314_s10, 1024, %s316_s22, %s1647_s27, %s1866_s24, %s1866_s24, %s1865_s7  }
  0x41   : > { %s1312_s9 = scalar_lea.vmem %s265_s3, 1024  ;;  %p1320_p8 = scmp.lt.s32.totalorder %s265_s3, %s265_s3 }
  0x42   : > { %p1313_p1 = scmp.ne.s32.totalorder %s265_s3, %s1312_s9  ;;  %p1321_p7 = scmp.lt.s32.totalorder %s1312_s9, %s1312_s9 }
  0x44   : > { %p1315_p2 = pnand %p1313_p1, %p1249_p6  ;;  %p1322_p11 = por %p1321_p7, %p1320_p8 }
  0x46   : > { %p1316_p5 = pneg %p1315_p2 }
  0x48   : > { %p1323_p10 = pnand %p1322_p11, %p1316_p5 }
  0x4a   : > { %1326 = shalt.err (!%p1323_p10)
}
  0x4b   : > { %1135 = dma.hbm_to_vmem [thread:$0]  (!%p1597_p4), %s1828_s5, 1024, %s265_s3, [#allocation9], %s1866_s24, %s1866_s24, %s1865_s7  }
  0x4c   : > { %s983_s22 = sshll.u32 %s1603_s19, 3  ;;  %s1029_s20 = sshll.u32 %s1467_s28, 7 }
  0x4d   : > { %s293_s12 = scalar_lea.hbm %s1823_s0, %s1029_s20  ;;  %s285_s13 = scalar_lea.vmem [#allocation2], %s983_s22 }
  0x4e   : > { %s294_s17 = sshll.u32 %s285_s13, 4  ;;  %s989_s16 = sshll.u32 %s1603_s19, 1  ;;  %s295_s17 = int_to_ptr.vmem [resolvable:$true] %s294_s17 }
  0x4f   : > { %s282_s9 = scalar_lea.sflag [#allocation3], %s1603_s19  ;;  %s1340_s1 = scalar_lea.vmem %s295_s17, 128 }
  0x50   : > { %p1341_p7 = scmp.ne.s32.totalorder %s295_s17, %s1340_s1  ;;  %p1867_p8 = pneg %p1630_p9 }
  0x51   : > { %s1478_s18 = smov [#allocation2]  }
  0x52   : > { %p1343_p6 = pnand %p1341_p7, %p1867_p8  ;;  %s1345_s23 = sshll.u32 %s1478_s18, 4  ;;  %s1346_s23 = int_to_ptr.vmem [resolvable:$false] %s1345_s23 }
  0x53   : > { %s1347_s3 = scalar_lea.vmem %s1346_s23, 256  ;;  %p1348_p4 = scmp.lt.s32.totalorder %s295_s17, %s1346_s23 }
  0x54   : > { %p1344_p5 = pneg %p1343_p6  ;;  %p1349_p13 = scmp.lt.s32.totalorder %s1347_s3, %s1340_s1 }
  0x56   : > { %p1350_p3 = por %p1349_p13, %p1348_p4 }
  0x58   : > { %p1351_p0 = pnand %p1350_p3, %p1344_p5 }
  0x5a   : > { %1354 = shalt.err (!%p1351_p0)
}
  0x5b   : > { %1139 = dma.hbm_to_vmem [thread:$0]  (!%p1630_p9), %s293_s12, 128, %s295_s17, %s282_s9, %s1866_s24, %s1866_s24, %s1865_s7  }
  0x5c   : > { %s990_s19 = sshll.u32 %s1467_s28, 5  ;;  %s329_s22 = scalar_lea.vmem [#allocation7], %s989_s16 }
  0x5d   : > { %s336_s20 = sshll.u32 %s329_s22, 4  ;;  %s334_s13 = scalar_lea.hbm %s1825_s2, %s990_s19  ;;  %s337_s20 = int_to_ptr.vmem [resolvable:$true] %s336_s20 }
  0x5e   : > { %s1368_s1 = scalar_lea.vmem %s337_s20, 32  ;;  %p1868_p2 = pmov %p1867_p8 }
  0x5f   : > { %p1369_p1 = scmp.ne.s32.totalorder %s337_s20, %s1368_s1  ;;  %s1479_s18 = smov [#allocation7]  }
  0x60   : > { %s1373_s23 = sshll.u32 %s1479_s18, 4  ;;  %s1374_s23 = int_to_ptr.vmem [resolvable:$false] %s1373_s23 }
  0x61   : > { %p1371_p11 = pnand %p1369_p1, %p1868_p2  ;;  %s1375_s3 = scalar_lea.vmem %s1374_s23, 64 }
  0x62   : > { %p1376_p7 = scmp.lt.s32.totalorder %s337_s20, %s1374_s23  ;;  %p1377_p8 = scmp.lt.s32.totalorder %s1375_s3, %s1368_s1 }
  0x63   : > { %p1372_p10 = pneg %p1371_p11 }
  0x64   : > { %p1378_p6 = por %p1377_p8, %p1376_p7 }
  0x66   : > { %p1379_p5 = pnand %p1378_p6, %p1372_p10 }
  0x68   : > { %1382 = shalt.err (!%p1379_p5)
}
  0x69   : > { %1145 = dma.hbm_to_vmem [thread:$0]  (!%p1630_p9), %s334_s13, 32, %s337_s20, %s1647_s27  }
  0x6a   : > { %345 = sbr.rel (%p1587_p12) target bundleno = 1099 (0x44b), region = 48  ;;  %s1699_s7 = sand.u32 (!%p1587_p12), 1, %s1455_s25  }
  0x6b   : > { %s992_s24 = sshll.u32 (!%p1587_p12), %s1699_s7, 3  ;;  %s348_s12 = scalar_lea.sflag (!%p1587_p12), [#allocation3], %s1699_s7 }
  0x6c   : > { %s1703_s17 = scalar_lea.vmem (!%p1587_p12), [#allocation2], %s992_s24  ;;  %p1869_p4 = scmp.ne.s32.totalorder (!%p1587_p12), %s1851_s11, 0 }
  0x6f   : > { %1434 = dma.done.wait (%p1869_p4), %s348_s12, 128  }
  0x70   : > { %1436 = vsyncadd (%p1869_p4), %s348_s12, 4294967168  ;;  %s356_s27 = sand.u32 1, %s1556_s30   ;;  %s993_s14 = sshll.u32 %s1699_s7, 6 }
  0x71   : > { %s357_s21 = scalar_lea.sflag [#allocation6], %s356_s27  ;;  %s1711_s16 = scalar_lea.vmem [#allocation5], %s993_s14 }
  0x72   : > { %1438 = dma.done.wait (%p1869_p4), %s357_s21, 1056  }
  0x73   : > { %1440 = vsyncadd (%p1869_p4), %s357_s21, 4294966240  ;;  %s994_s9 = sshll.u32 %s1699_s7, 1  ;;  %p1870_p12 = scmp.eq.s32.totalorder %s1556_s30, 0 }
  0x74   : > { %s1718_s19 = scalar_lea.vmem [#allocation7], %s994_s9 }
  0x75   : > { %1442 = dma.done.wait (%p1870_p12), [#allocation9], 1792   ;;  %p1871_p9 = pmov %p1870_p12 }
  0x76   : > { %v1480_v0 = vmov 0.0   ;;  %vm1481_vm0 = vmmov 0   ;;  %v1212_v1 = vld [vmem:[#allocation8 + $0x28] sm:$0xff]   ;;  %v1213_v2 = vld [vmem:[#allocation8 + $0x20] sm:$0xff]   ;;  %v1214_v3 = vld [vmem:[#allocation8 + $0x18] sm:$0xff]   ;;  %vm483_vm1 = vcmask 785408   ;;  %v756_v44 = vlaneseq }
  0x77   : > { %1444 = vsyncadd (%p1871_p9), [#allocation9], 4294965504  ;;  %1057 = vmatprep.subr.bf16.mxu1 %v1480_v0  ;;  %1069 = vmatprep.mubr.msk.bf16.mxu1 %vm1481_vm0, %v1480_v0  ;;  %v1215_v4 = vld [vmem:[#allocation8 + $0x10] sm:$0xff]   ;;  %v1216_v5 = vld [vmem:[#allocation8 + $0x8] sm:$0xff]   ;;  %s1872_s10 = sld [smem:[#allocation17_spill]]  ;;  %s997_s15 = sshll.u32 %s1699_s7, 4 }
  0x78   : > { %1093 = vmatprep.subr.bf16.mxu0 %v1480_v0  ;;  %1109 = vmatprep.mubr.msk.bf16.mxu0 %vm1481_vm0, %v1480_v0  ;;  %v1217_v6 = vld [vmem:[#allocation8] sm:$0xff]   ;;  %v1218_v7 = vld [vmem:[%s1703_s17] sm:$0xff]   ;;  %v757_v45 = vshrl.u32 %v756_v44, 7  ;;  %v755_v47 = vld [vmem:[%s1718_s19] sm:$0x3]  ;;  %s1873_s13 = sld [smem:[#allocation18_spill]] }
  0x79   : > { %1058 = vmatpush3.bf16.msra.mxu1 %v1212_v1  ;;  %v1219_v8 = vld [vmem:[#allocation10 + $0x38] sm:$0xff]   ;;  %v1220_v9 = vld [vmem:[#allocation10 + $0x30] sm:$0xff]   ;;  %v1221_v10 = vld [vmem:[#allocation10 + $0x28] sm:$0xff]   ;;  %s417_s1 = scalar_lea.vmem [#allocation11], %s997_s15  ;;  %s1874_s12 = sld [smem:[#allocation23_spill]] }
  0x7a   : > { %1059 = vmatprep.subr.bf16.mxu1 %v1480_v0  ;;  %v1222_v11 = vld [vmem:[#allocation10 + $0x20] sm:$0xff]   ;;  %v1223_v12 = vld [vmem:[#allocation10 + $0x18] sm:$0xff]   ;;  %v1224_v13 = vld [vmem:[#allocation10 + $0x10] sm:$0xff]   ;;  %v758_v46 = vsub.s32 0, %v757_v45  ;;  %v786_v63 = vsub.s32 1, %v757_v45  ;;  %s828_s18 = sshll.u32 %s417_s1, 4  ;;  %s1770_s18 = int_to_ptr.vmem [resolvable:$true] %s828_s18 }
  0x7b   : > { %v1225_v14 = vld [vmem:[#allocation10 + $0x8] sm:$0xff]   ;;  %v1226_v15 = vld [vmem:[#allocation10] sm:$0xff]   ;;  %v1229_v18 = vld [vmem:[%s1711_s16 + $0x28] sm:$0xff]   ;;  %s813_s27 = scalar_lea.sflag [#allocation4], %s1699_s7  ;;  %s1383_s14 = scalar_lea.vmem %s1770_s18, 256 }
  0x7c   : > { %v1227_v16 = vld [vmem:[%s1711_s16 + $0x38] sm:$0xff]   ;;  %v1228_v17 = vld [vmem:[%s1711_s16 + $0x30] sm:$0xff]   ;;  %v1230_v19 = vld [vmem:[%s1711_s16 + $0x20] sm:$0xff]   ;;  %v759_v49 = vrot.slane %v755_v47, %v758_v46  ;;  %p1384_p13 = scmp.ne.s32.totalorder %s1770_s18, %s1383_s14  ;;  %s1482_s21 = smov [#allocation11]  }
  0x7d   : > { %1060 = vmatpush3.bf16.msra.mxu1 %v1213_v2  ;;  %1094 = vmatpush3.bf16.xpose.msra.mxu0 %v1227_v16  ;;  %v1231_v20 = vld [vmem:[%s1711_s16 + $0x18] sm:$0xff]   ;;  %v1232_v21 = vld [vmem:[%s1711_s16 + $0x10] sm:$0xff]   ;;  %v1233_v22 = vld [vmem:[%s1711_s16 + $0x8] sm:$0xff]   ;;  %s1031_s23 = sshll.u32 %s1872_s10, 8 }
  0x7e   : > { %1061 = vmatprep.subr.bf16.mxu1 %v1480_v0  ;;  %1095 = vmatprep.subr.bf16.mxu0 %v1480_v0  ;;  %v998_v23 = vld [vmem:[%s1827_s4] ss:$0 sm:$0xff]  ;;  %v1234_v33 = vld [vmem:[%s1711_s16] sm:$0xff]   ;;  %p1875_p3 = scmp.ne.s32.totalorder %s1873_s13, 0  ;;  %s1387_s16 = sshll.u32 %s1482_s21, 4  ;;  %s1388_s16 = int_to_ptr.vmem [resolvable:$false] %s1387_s16 }
  0x7f   : > { %v1007_v34 = vld [vmem:[%s1829_s6] ss:$0 sm:$0xff]  ;;  %s1775_s17 = scalar_lea.hbm %s1874_s12, %s1031_s23  ;;  %s1389_s9 = scalar_lea.vmem %s1388_s16, 512 }
  0x80   : > { %p1385_p0 = pnand %p1384_p13, %p1875_p3  ;;  %p1390_p2 = scmp.lt.s32.totalorder %s1770_s18, %s1388_s16 }
  0x81   : > { %1062 = vmatpush3.bf16.msra.mxu1 %v1214_v3  ;;  %p1391_p11 = scmp.lt.s32.totalorder %s1389_s9, %s1383_s14 }
  0x82   : > { %1063 = vmatprep.subr.bf16.mxu1 %v1480_v0  ;;  %p1386_p1 = pneg %p1385_p0 }
  0x83   : > { %p1392_p10 = por %p1391_p11, %p1390_p2 }
  0x85   : > { %1064 = vmatpush3.bf16.msra.mxu1 %v1215_v4  ;;  %1096 = vmatpush3.bf16.xpose.msra.mxu0 %v1228_v17  ;;  %v787_v4 = vrot.slane %v755_v47, %v786_v63  ;;  %p1393_p7 = pnand %p1392_p10, %p1386_p1 }
  0x86   : > { %1065 = vmatprep.subr.bf16.mxu1 %v1480_v0  ;;  %1097 = vmatprep.subr.bf16.mxu0 %v1480_v0 }
  0x89   : > { %1066 = vmatpush3.bf16.msra.mxu1 %v1216_v5 }
  0x8a   : > { %1067 = vmatprep.subr.bf16.mxu1 %v1480_v0 }
  0x8d   : > { %1068 = vmatpush3.bf16.msra.mxu1 %v1217_v6  ;;  %1098 = vmatpush3.bf16.xpose.msra.mxu0 %v1229_v18 }
  0x8e   : > { %1073 = vmatprep.subr.bf16.mxu1 %v1480_v0  ;;  %1099 = vmatprep.subr.bf16.mxu0 %v1480_v0 }
  0x90   : > { %1070 = vmatmul.mubr.msk.bf16.vlgmr.msra.gmra.mxu1 %vm483_vm1, %v1218_v7 }
  0x91   : > { %1074 = vmatpush3.bf16.msra.mxu1 %v1219_v8  ;;  %1089 = vmatprep.mubr.msk.bf16.mxu1 %vm1481_vm0, %v1480_v0 }
  0x92   : > { %1075 = vmatprep.subr.bf16.mxu1 %v1480_v0 }
  0x95   : > { %1076 = vmatpush3.bf16.msra.mxu1 %v1220_v9  ;;  %1100 = vmatpush3.bf16.xpose.msra.mxu0 %v1230_v19 }
  0x96   : > { %1077 = vmatprep.subr.bf16.mxu1 %v1480_v0  ;;  %1101 = vmatprep.subr.bf16.mxu0 %v1480_v0 }
  0x99   : > { %1078 = vmatpush3.bf16.msra.mxu1 %v1221_v10 }
  0x9a   : > { %1079 = vmatprep.subr.bf16.mxu1 %v1480_v0 }
  0x9d   : > { %1080 = vmatpush3.bf16.msra.mxu1 %v1222_v11  ;;  %1102 = vmatpush3.bf16.xpose.msra.mxu0 %v1231_v20 }
  0x9e   : > { %1081 = vmatprep.subr.bf16.mxu1 %v1480_v0  ;;  %1103 = vmatprep.subr.bf16.mxu0 %v1480_v0 }
  0xa1   : > { %1082 = vmatpush3.bf16.msra.mxu1 %v1223_v12 }
  0xa2   : > { %1083 = vmatprep.subr.bf16.mxu1 %v1480_v0 }
  0xa5   : > { %1084 = vmatpush3.bf16.msra.mxu1 %v1224_v13  ;;  %1104 = vmatpush3.bf16.xpose.msra.mxu0 %v1232_v21 }
  0xa6   : > { %1085 = vmatprep.subr.bf16.mxu1 %v1480_v0  ;;  %1105 = vmatprep.subr.bf16.mxu0 %v1480_v0 }
  0xa9   : > { %1086 = vmatpush3.bf16.msra.mxu1 %v1225_v14 }
  0xaa   : > { %1087 = vmatprep.subr.bf16.mxu1 %v1480_v0 }
  0xad   : > { %1088 = vmatpush3.bf16.msra.mxu1 %v1226_v15  ;;  %1106 = vmatpush3.bf16.xpose.msra.mxu0 %v1233_v22 }
  0xae   : > { %1107 = vmatprep.subr.bf16.mxu0 %v1480_v0 }
  0xb5   : > { %1108 = vmatpush3.bf16.xpose.msra.mxu0 %v1234_v33 }
 0x150   : > { %v521_v24 = vpop.f32.mrf.mxu1 }
 0x151   : > { %v522_v26 = vadd.f32 %v998_v23, %v521_v24 }
 0x152   : > { %v1071_v25 = vpop.f32.mrf.mxu1 }
 0x153   : > { %v528_v30 = vmax.f32 %v522_v26, 0.0 }
 0x154   : > { %v524_v27 = vpop.f32.mrf.mxu1 }
 0x155   : > { %v525_v28 = vadd.f32 %v998_v23, %v524_v27 }
 0x156   : > { %v1072_v29 = vpop.f32.mrf.mxu1 }
 0x157   : > { %v529_v31 = vmax.f32 %v525_v28, 0.0 }
 0x159   : > { %v530_v32 = vpack.c.bf16 %v529_v31, %v528_v30 }
 0x15b   : > { %1090 = vmatmul.mubr.bf16.vlgmr.msra.gmra.mxu1 %v530_v32 }
 0x21b   : > { %v636_v35 = vpop.f32.mrf.mxu1 }
 0x21c   : > { %v637_v36 = vadd.f32 %v1007_v34, %v636_v35 }
 0x21d   : > { %v1091_v37 = vpop.f32.mrf.mxu1 }
 0x21e   : > { %v749_v38 = vmul.f32 %v637_v36, %v637_v36 }
 0x21f   : > { %v639_v39 = vpop.f32.mrf.mxu1 }
 0x220   : > { %v640_v40 = vadd.f32 %v1007_v34, %v639_v39  ;;  %751 = vadd.xlane.f32.xlu0 %v749_v38 }
 0x221   : > { %v1092_v41 = vpop.f32.mrf.mxu1 }
 0x222   : > { %v659_v42 = vpack.c.bf16 %v640_v40, %v637_v36  ;;  %v750_v43 = vmul.f32 %v640_v40, %v640_v40 }
 0x224   : > { %753 = vadd.xlane.f32.xlu0 %v750_v43  ;;  %1110 = vmatmul.mubr.bf16.vlgmr.msra.gmra.mxu0 %v659_v42 }
 0x2a9   : > { %v752_v48 = vpop.xlane.xlu0 %751 }
 0x2aa   : > { %v760_v51 = vadd.f32 %v759_v49, %v752_v48 }
 0x2ad   : > { %v754_v53 = vpop.xlane.xlu0 %753 }
 0x2ae   : > { %v761_v57 = vadd.f32 %v759_v49, %v754_v53 }
 0x2e4   : > { %v742_v50 = vpop.f32.mrf.mxu0 }
 0x2e5   : > { %v762_v52 = vmul.f32 2.0, %v742_v50 }
 0x2e6   : > { %v1111_v54 = vpop.f32.mrf.mxu0 }
 0x2e7   : > { %v764_v55 = vsub.f32 %v760_v51, %v762_v52 }
 0x2e8   : > { %v745_v56 = vpop.f32.mrf.mxu0 }
 0x2e9   : > { %v766_v58 = vmax.f32 %v764_v55, 0.0  ;;  %v763_v59 = vmul.f32 2.0, %v745_v56 }
 0x2ea   : > { %v1112_v60 = vpop.f32.mrf.mxu0 }
 0x2eb   : > { %1235 = vrsqrt.f32 %v766_v58  ;;  %v765_v61 = vsub.f32 %v761_v57, %v763_v59  ;;  %vm770_vm2 = vcmp.eq.f32.partialorder %v766_v58, inf  ;;  %v773_v2 = vand.u32 2147483648, %v766_v58 }
 0x2ec   : > { %vm772_vm3 = vcmp.eq.f32.partialorder %v766_v58, 0.0 }
 0x2ed   : > { %v767_v62 = vmax.f32 %v765_v61, 0.0 }
 0x2ef   : > { %1237 = vrsqrt.f32 %v767_v62  ;;  %vm777_vm4 = vcmp.eq.f32.partialorder %v767_v62, inf  ;;  %v780_v9 = vand.u32 2147483648, %v767_v62  ;;  %vm779_vm5 = vcmp.eq.f32.partialorder %v767_v62, 0.0 }
 0x2f8   : > { %v1236_v0 = vpop.eup %1235 }
 0x2f9   : > { %v769_v1 = vmul.f32 %v1236_v0, %v766_v58 }
 0x2fb   : > { %v771_v3 = vsel %vm770_vm2, %v766_v58, %v769_v1 }
 0x2fc   : > { %v1238_v5 = vpop.eup %1237  ;;  %v774_v6 = vsel %vm772_vm3, %v773_v2, %v771_v3 }
 0x2fd   : > { %v782_v7 = vmul.f32 -1.0, %v774_v6  ;;  %v776_v8 = vmul.f32 %v1238_v5, %v767_v62 }
 0x2ff   : > { %v788_v10 = vadd.f32 %v787_v4, %v782_v7  ;;  %v778_v11 = vsel %vm777_vm4, %v767_v62, %v776_v8 }
 0x300   : > { %v781_v12 = vsel %vm779_vm5, %v780_v9, %v778_v11 }
 0x301   : > { %790 = vmax.xlane.f32.xlu1 %v788_v10  ;;  %v783_v13 = vmul.f32 -1.0, %v781_v12 }
 0x303   : > { %v789_v14 = vadd.f32 %v787_v4, %v783_v13 }
 0x305   : > { %792 = vmax.xlane.f32.xlu1 %v789_v14 }
 0x38a   : > { %v791_v15 = vpop.xlane.xlu1 %790 }
 0x38b   : > { %v794_v16 = vsub.f32 %v788_v10, %v791_v15 }
 0x38d   : > { %v796_v17 = vmul.f32 1.442695, %v794_v16 }
 0x38e   : > { %v793_v18 = vpop.xlane.xlu1 %792 }
 0x38f   : > { %1239 = vpow2.f32 %v796_v17  ;;  %v795_v19 = vsub.f32 %v789_v14, %v793_v18 }
 0x391   : > { %v798_v20 = vmul.f32 1.442695, %v795_v19 }
 0x393   : > { %1241 = vpow2.f32 %v798_v20 }
 0x39c   : > { %v1240_v21 = vpop.eup %1239 }
 0x39d   : > { %800 = vadd.xlane.f32.xlu0 %v1240_v21 }
 0x3a0   : > { %v1242_v22 = vpop.eup %1241 }
 0x3a1   : > { %802 = vadd.xlane.f32.xlu1 %v1242_v22 }
 0x426   : > { %v801_v23 = vpop.xlane.xlu0 %800 }
 0x427   : > { %1243 = vlog2.f32 %v801_v23 }
 0x42a   : > { %v803_v24 = vpop.xlane.xlu1 %802 }
 0x42b   : > { %1245 = vlog2.f32 %v803_v24 }
 0x434   : > { %v1244_v25 = vpop.eup %1243 }
 0x435   : > { %v805_v26 = vmul.f32 0.6931472, %v1244_v25 }
 0x437   : > { %v808_v27 = vsub.f32 %v794_v16, %v805_v26 }
 0x438   : > { %v1246_v28 = vpop.eup %1245 }
 0x439   : > { %810 = vst [vmem:[%s417_s1] sm:$0xff] %v808_v27  ;;  %v807_v29 = vmul.f32 0.6931472, %v1246_v28 }
 0x43b   : > { %v809_v30 = vsub.f32 %v795_v19, %v807_v29 }
 0x43d   : > { %811 = vst [vmem:[%s417_s1 + $0x8] sm:$0xff] %v809_v30 }
 0x43e   : > { %1396 = shalt.err (!%p1393_p7)
}
 0x43f   : > { %s1397_s19 = scalar_lea.hbm %s1775_s17, 256  ;;  %s1401_s22 = scalar_lea.hbm %s1874_s12, 512 }
 0x440   : > { %p1398_p8 = scmp.ne.s32.totalorder %s1775_s17, %s1397_s19  ;;  %p1402_p4 = scmp.lt.s32.totalorder %s1775_s17, %s1874_s12 }
 0x441   : > { %p1403_p12 = scmp.lt.s32.totalorder %s1401_s22, %s1397_s19 }
 0x442   : > { %p1399_p6 = pnand %p1398_p8, %p1875_p3 }
 0x443   : > { %p1404_p9 = por %p1403_p12, %p1402_p4 }
 0x444   : > { %p1400_p5 = pneg %p1399_p6 }
 0x446   : > { %p1405_p13 = pnand %p1404_p9, %p1400_p5 }
 0x448   : > { %1408 = shalt.err (!%p1405_p13)
}
 0x449   : > { %s1483_s15 = smov 128   ;;  %s1484_s1 = smov 8  }
 0x44a   : > { %1127 = dma.vmem_to_hbm [thread:$0]  (%p1875_p3), %s1770_s18, 256, %s1775_s17, %s813_s27, %s1483_s15, %s1483_s15, %s1484_s1  }
 0x44b PF: > { %s1876_s23 = sld [smem:[#allocation16_spill]]  ;;  %p1879_p1 = scmp.ge.s32.totalorder %s1471_s29, 2 }
 0x44c   : > { %s1877_s3 = sld [smem:[#allocation19_spill]] }
 0x451   : > { %s843_s24 = sand.u32 1, %s1876_s23  }
 0x452   : > { %p1878_p0 = scmp.ne.s32.totalorder %s1877_s3, 0  ;;  %s844_s14 = scalar_lea.sflag [#allocation4], %s843_s24 }
 0x454   : > { %p1147_p2 = pnand %p1879_p1, %p1878_p0 }
 0x456   : > { %p1148_p11 = pneg %p1147_p2 }
 0x458   : > { %1446 = dma.done.wait (%p1148_p11), %s844_s14, 256  }
 0x459   : > { %1448 = vsyncadd (%p1148_p11), %s844_s14, 4294967040  ;;  %s27_s29 = sadd.s32 1, %s1471_s29   ;;  %s1880_s7 = sld [smem:[#allocation20_spill]] }
 0x45a   : > { %p24_p10 = scmp.ge.s32.totalorder %s27_s29, 4   ;;  %s1881_s24 = smov %s1455_s25 }
 0x45b   : > { %s1882_s25 = smov %s1459_s26  ;;  %s1883_s26 = smov %s1642_s8 }
 0x45c   : > { %s1884_s27 = smov %s1467_s28  ;;  %26 = sbr.rel (!%p24_p10) target bundleno = 13 (0xd), region = 125 }
 0x45f   : > { %s1885_s28 = smov %s1880_s7 }
 0x461   :  { %849 = vsyncpa [#allocation3], 1 }
 0x462   :  { %851 = vsyncpa [#allocation3 + $0x1], 1 }
 0x463   :  { %852 = vsyncpa [#allocation6], 1 }
 0x464   :  { %854 = vsyncpa [#allocation6 + $0x1], 1 }
 0x465   :  { %855 = vsyncpa [#allocation9], 1 }
 0x466   :  { %856 = vsyncpa [#allocation4], 1 }
 0x467   :  { %858 = vsyncpa [#allocation4 + $0x1], 1 }

</bundles_post_ra>
